<compile_context>
chip_gen: v5e
topology: v5e:2x2
jax: 0.10.0
libtpu: 0.0.40
codegen_flags: <defaults>
</compile_context>

<pallas_src>
import functools

import jax
import jax.numpy as jnp
from jax import lax
from jax.experimental import pallas as pl
from jax.experimental.pallas import tpu as pltpu

BN_EPS = 1e-5

D_PAD = 128    # padded concatenated-feature width (real d_in <= 128)
H1 = 128
H2 = 64
H2_PAD = 128   # layer-2 width kept lane-dense
H3 = 16
H3_PAD = 128   # layer-3 computed lane-dense; only first 16 lanes are stored


def _bn_relu(z, gamma, beta):
    """BatchNorm1d (training-mode biased batch stats) + ReLU, single f32 pass."""
    inv_n = 1.0 / z.shape[0]
    s = jnp.sum(z, axis=0, keepdims=True)
    ss = jnp.sum(z * z, axis=0, keepdims=True)
    mu = s * inv_n
    var = jnp.maximum(ss * inv_n - mu * mu, 0.0)      # clamp f32 cancellation
    scale = gamma * lax.rsqrt(var + BN_EPS)           # rsqrt -> EUP slot
    return jnp.maximum((z - mu) * scale + beta, 0.0)


def _encoder_kernel(idx_ref, xo_ref, tbl_ref, place_ref,
                    w1_ref, w2_ref, w3_ref, bn_ref, o_ref, *, offsets):
    B = idx_ref.shape[0]
    R = tbl_ref.shape[0]

    # ---- fused embedding gather + concat: multi-hot @ packed table ----------
    idx = idx_ref[...]                                           # (B, 4) int32
    lane = lax.broadcasted_iota(jnp.int32, (B, R), 1)
    oh = jnp.zeros((B, R), jnp.float32)
    for j, off in enumerate(offsets):                            # 4 compares (VPU)
        oh = oh + (lane == (idx[:, j:j + 1] + off)).astype(jnp.float32)
    # exact f32 gather+concat: each table's rows occupy disjoint lane ranges
    x = jnp.dot(oh, tbl_ref[...], preferred_element_type=jnp.float32)
    # place the dense x_other features into their lane range
    x = x + jnp.dot(xo_ref[...], place_ref[...],
                    preferred_element_type=jnp.float32)          # (B, 128) f32

    # ---- fc1/fc2/fc3 each followed by BN + ReLU (bf16 MXU, f32 VPU/EUP) -----
    z1 = jnp.dot(x.astype(jnp.bfloat16), w1_ref[...],
                 preferred_element_type=jnp.float32)
    h1 = _bn_relu(z1, bn_ref[0:1, :], bn_ref[1:2, :])            # (B, 128)

    z2 = jnp.dot(h1.astype(jnp.bfloat16), w2_ref[...],
                 preferred_element_type=jnp.float32)
    h2 = _bn_relu(z2, bn_ref[2:3, :], bn_ref[3:4, :])            # (B, 128), lanes 64: are 0

    z3 = jnp.dot(h2.astype(jnp.bfloat16), w3_ref[...],
                 preferred_element_type=jnp.float32)
    h3 = _bn_relu(z3, bn_ref[4:5, :], bn_ref[5:6, :])            # (B, 128), lanes 16: are 0

    o_ref[...] = h3[:, :H3].astype(o_ref.dtype)                  # true (B, 16) output


def pack_params(params):
    """One-time packing of embedding tables + MLP params into the kernel layout."""
    tables = [params["emb_customer"], params["emb_addr"],
              params["emb_age"], params["emb_country"]]
    emb_tot = sum(int(t.shape[1]) for t in tables)
    rows = sum(int(t.shape[0]) for t in tables)
    r_pad = max(128, ((rows + 127) // 128) * 128)
    d_in = int(params["w1"].shape[0])
    in_size = d_in - emb_tot
    assert d_in <= D_PAD

    # combined embedding table: table i's rows in its own (row, lane) block
    tbl = jnp.zeros((r_pad, D_PAD), jnp.float32)
    offsets = []
    ro, lo = 0, 0
    for t in tables:
        n, d = int(t.shape[0]), int(t.shape[1])
        tbl = tbl.at[ro:ro + n, lo:lo + d].set(t)
        offsets.append(ro)
        ro += n
        lo += d

    # placement matrix: x_other lane i -> concatenated-feature lane emb_tot + i
    place = jnp.zeros((in_size, D_PAD), jnp.float32)
    place = place.at[jnp.arange(in_size), emb_tot + jnp.arange(in_size)].set(1.0)

    w1 = jnp.zeros((D_PAD, H1), jnp.float32).at[:d_in, :].set(params["w1"])
    w2 = jnp.zeros((H1, H2_PAD), jnp.float32).at[:, :H2].set(params["w2"])
    w3 = jnp.zeros((H2_PAD, H3_PAD), jnp.float32).at[:H2, :H3].set(params["w3"])

    def pad_row(v, fill):
        row = jnp.full((1, D_PAD), fill, jnp.float32)
        return row.at[:, : v.shape[1]].set(v)

    bn = jnp.concatenate(
        [pad_row(params["g1"], 1.0), pad_row(params["be1"], 0.0),
         pad_row(params["g2"], 1.0), pad_row(params["be2"], 0.0),
         pad_row(params["g3"], 1.0), pad_row(params["be3"], 0.0)],
        axis=0)                                                  # (6, 128) f32

    return {
        "tbl": tbl, "place": place,
        "w1": w1.astype(jnp.bfloat16), "w2": w2.astype(jnp.bfloat16),
        "w3": w3.astype(jnp.bfloat16), "bn": bn,
        "offsets": tuple(offsets),                               # static Python ints
    }


def customer_encoder_forward(packed, x_customer, x_addr, x_age, x_country, x_other):
    """Fully-fused forward: gathers + concat + 3x(fc+BN+ReLU) in one pallas_call."""
    B = x_other.shape[0]
    idx = jnp.stack([x_customer, x_addr, x_age, x_country], axis=1).astype(jnp.int32)

    kernel = functools.partial(_encoder_kernel, offsets=packed["offsets"])
    vmem = pl.BlockSpec(memory_space=pltpu.MemorySpace.VMEM)

    # TODO(synk): for large B, switch to a batch grid (BlockSpec((TILE_B,128), ...),
    # weights/bn resident) with a two-phase stats-accumulate + apply structure per BN
    # layer (per-tile stats would change semantics); only then mark the batch axis
    # "parallel" for v7x's 2 TCs and re-derive TILE_B against 64 MiB VMEM.
    out = pl.pallas_call(
        kernel,
        out_shape=jax.ShapeDtypeStruct((B, H3), jnp.float32),
        in_specs=[vmem] * 8,
        out_specs=vmem,
        compiler_params=pltpu.CompilerParams(vmem_limit_bytes=8 * 1024 * 1024),
    )(idx, x_other, packed["tbl"], packed["place"],
      packed["w1"], packed["w2"], packed["w3"], packed["bn"])
    return out


def init_params(key, input_size, num_customer, num_addr, num_age, num_country,
                customer_emb_dim, addr_emb_dim, age_emb_dim, country_emb_dim):
    """Deterministic synthetic parameter init (shapes match the PyTorch module)."""
    keys = jax.random.split(key, 16)
    d_in = input_size + customer_emb_dim + addr_emb_dim + age_emb_dim + country_emb_dim

    def lin(kw, kb, fan_in, fan_out):
        lim = 1.0 / jnp.sqrt(fan_in)
        w = jax.random.uniform(kw, (fan_in, fan_out), jnp.float32, -lim, lim)
        b = jax.random.uniform(kb, (1, fan_out), jnp.float32, -lim, lim)
        return w, b

    w1, b1 = lin(keys[0], keys[1], d_in, 128)
    w2, b2 = lin(keys[2], keys[3], 128, 64)
    w3, b3 = lin(keys[4], keys[5], 64, 16)

    return {
        # embedding tables (N(0,1) like nn.Embedding default)
        "emb_customer": jax.random.normal(keys[6], (num_customer, customer_emb_dim), jnp.float32),
        "emb_addr": jax.random.normal(keys[7], (num_addr, addr_emb_dim), jnp.float32),
        "emb_age": jax.random.normal(keys[8], (num_age, age_emb_dim), jnp.float32),
        "emb_country": jax.random.normal(keys[9], (num_country, country_emb_dim), jnp.float32),
        # fc layers (biases kept only for the reference; BatchNorm cancels them)
        "w1": w1, "b1": b1, "w2": w2, "b2": b2, "w3": w3, "b3": b3,
        # batchnorm affine params (gamma=1, beta=0 like PyTorch default)
        "g1": jnp.ones((1, 128), jnp.float32), "be1": jnp.zeros((1, 128), jnp.float32),
        "g2": jnp.ones((1, 64), jnp.float32), "be2": jnp.zeros((1, 64), jnp.float32),
        "g3": jnp.ones((1, 16), jnp.float32), "be3": jnp.zeros((1, 16), jnp.float32),
    }


def _reference_forward(params, x_customer, x_addr, x_age, x_country, x_other):
    """Pure-JAX f32 reference matching the PyTorch module exactly."""
    e_customer = jnp.take(params["emb_customer"], x_customer, axis=0)
    e_addr = jnp.take(params["emb_addr"], x_addr, axis=0)
    e_age = jnp.take(params["emb_age"], x_age, axis=0)
    e_country = jnp.take(params["emb_country"], x_country, axis=0)
    h = jnp.concatenate((e_customer, e_addr, e_age, e_country, x_other), axis=1)

    def layer(h, w, b, g, be):
        z = h @ w + b
        mu = jnp.mean(z, axis=0, keepdims=True)
        var = jnp.mean((z - mu) ** 2, axis=0, keepdims=True)
        return jnp.maximum((z - mu) * lax.rsqrt(var + BN_EPS) * g + be, 0.0)

    h = layer(h, params["w1"], params["b1"], params["g1"], params["be1"])
    h = layer(h, params["w2"], params["b2"], params["g2"], params["be2"])
    h = layer(h, params["w3"], params["b3"], params["g3"], params["be3"])
    return h


if __name__ == "__main__":
    # Small, deterministic problem sizes.
    batch = 8
    input_size = 8          # x_other feature dim
    num_customer, customer_emb_dim = 64, 16
    num_addr, addr_emb_dim = 32, 8
    num_age, age_emb_dim = 16, 4
    num_country, country_emb_dim = 16, 4

    key = jax.random.PRNGKey(0)
    k_params, k_c, k_ad, k_ag, k_co, k_ot = jax.random.split(key, 6)

    params = init_params(k_params, input_size, num_customer, num_addr, num_age,
                         num_country, customer_emb_dim, addr_emb_dim,
                         age_emb_dim, country_emb_dim)
    packed = pack_params(params)   # one-time packing into kernel layout

    x_customer = jax.random.randint(k_c, (batch,), 0, num_customer, jnp.int32)
    x_addr = jax.random.randint(k_ad, (batch,), 0, num_addr, jnp.int32)
    x_age = jax.random.randint(k_ag, (batch,), 0, num_age, jnp.int32)
    x_country = jax.random.randint(k_co, (batch,), 0, num_country, jnp.int32)
    x_other = jax.random.normal(k_ot, (batch, input_size), jnp.float32)

    out = customer_encoder_forward(packed, x_customer, x_addr, x_age,
                                   x_country, x_other)
    out = jax.block_until_ready(out)

    ref = _reference_forward(params, x_customer, x_addr, x_age, x_country, x_other)
    assert out.shape == (batch, 16)
    # bf16 matmul operands + fused BN stats => slightly looser tolerance vs f32 ref.
    assert jnp.allclose(out, ref, atol=5e-2, rtol=5e-2), "Pallas kernel mismatch vs reference"

    print("KERNEL_OK")
</pallas_src>

<mosaic_0001>
module attributes {stable_mosaic.version = 11 : i64} {
  func.func @_encoder_kernel(%arg0: memref<8x4xi32, #tpu.memory_space<vmem>>, %arg1: memref<8x8xf32, #tpu.memory_space<vmem>>, %arg2: memref<128x128xf32, #tpu.memory_space<vmem>>, %arg3: memref<8x128xf32, #tpu.memory_space<vmem>>, %arg4: memref<128x128xbf16, #tpu.memory_space<vmem>>, %arg5: memref<128x128xbf16, #tpu.memory_space<vmem>>, %arg6: memref<128x128xbf16, #tpu.memory_space<vmem>>, %arg7: memref<6x128xf32, #tpu.memory_space<vmem>>, %arg8: memref<8x16xf32, #tpu.memory_space<vmem>>) attributes {dimension_semantics = [], scalar_prefetch = 0 : i64, scratch_operands = 0 : i64, tpu.core_type = #tpu.core_type<tc>} {
    %c0 = arith.constant 0 : index
    %c0_0 = arith.constant 0 : index
    %0 = vector.load %arg0[%c0, %c0_0] : memref<8x4xi32, #tpu.memory_space<vmem>>, vector<8x4xi32>
    %1 = tpu.iota {dimensions = array<i32: 1>} : vector<8x128xi32>
    %cst = arith.constant 0.000000e+00 : f32
    %2 = vector.broadcast %cst : f32 to vector<8x128xf32>
    %3 = vector.extract_strided_slice %0 {offsets = [0, 0], sizes = [8, 1], strides = [1, 1]} : vector<8x4xi32> to vector<8x1xi32>
    %c0_i32 = arith.constant 0 : i32
    %4 = vector.broadcast %c0_i32 : i32 to vector<8x1xi32>
    %5 = arith.addi %3, %4 : vector<8x1xi32>
    %6 = vector.broadcast %5 : vector<8x1xi32> to vector<8x128xi32>
    %7 = arith.cmpi eq, %1, %6 : vector<8x128xi32>
    %8 = arith.extui %7 : vector<8x128xi1> to vector<8x128xi32>
    %9 = arith.sitofp %8 : vector<8x128xi32> to vector<8x128xf32>
    %10 = arith.addf %2, %9 : vector<8x128xf32>
    %11 = vector.extract_strided_slice %0 {offsets = [0, 1], sizes = [8, 1], strides = [1, 1]} : vector<8x4xi32> to vector<8x1xi32>
    %c64_i32 = arith.constant 64 : i32
    %12 = vector.broadcast %c64_i32 : i32 to vector<8x1xi32>
    %13 = arith.addi %11, %12 : vector<8x1xi32>
    %14 = vector.broadcast %13 : vector<8x1xi32> to vector<8x128xi32>
    %15 = arith.cmpi eq, %1, %14 : vector<8x128xi32>
    %16 = arith.extui %15 : vector<8x128xi1> to vector<8x128xi32>
    %17 = arith.sitofp %16 : vector<8x128xi32> to vector<8x128xf32>
    %18 = arith.addf %10, %17 : vector<8x128xf32>
    %19 = vector.extract_strided_slice %0 {offsets = [0, 2], sizes = [8, 1], strides = [1, 1]} : vector<8x4xi32> to vector<8x1xi32>
    %c96_i32 = arith.constant 96 : i32
    %20 = vector.broadcast %c96_i32 : i32 to vector<8x1xi32>
    %21 = arith.addi %19, %20 : vector<8x1xi32>
    %22 = vector.broadcast %21 : vector<8x1xi32> to vector<8x128xi32>
    %23 = arith.cmpi eq, %1, %22 : vector<8x128xi32>
    %24 = arith.extui %23 : vector<8x128xi1> to vector<8x128xi32>
    %25 = arith.sitofp %24 : vector<8x128xi32> to vector<8x128xf32>
    %26 = arith.addf %18, %25 : vector<8x128xf32>
    %27 = vector.extract_strided_slice %0 {offsets = [0, 3], sizes = [8, 1], strides = [1, 1]} : vector<8x4xi32> to vector<8x1xi32>
    %c112_i32 = arith.constant 112 : i32
    %28 = vector.broadcast %c112_i32 : i32 to vector<8x1xi32>
    %29 = arith.addi %27, %28 : vector<8x1xi32>
    %30 = vector.broadcast %29 : vector<8x1xi32> to vector<8x128xi32>
    %31 = arith.cmpi eq, %1, %30 : vector<8x128xi32>
    %32 = arith.extui %31 : vector<8x128xi1> to vector<8x128xi32>
    %33 = arith.sitofp %32 : vector<8x128xi32> to vector<8x128xf32>
    %34 = arith.addf %26, %33 : vector<8x128xf32>
    %c0_1 = arith.constant 0 : index
    %c0_2 = arith.constant 0 : index
    %35 = vector.load %arg2[%c0_1, %c0_2] : memref<128x128xf32, #tpu.memory_space<vmem>>, vector<128x128xf32>
    %cst_3 = arith.constant dense<0.000000e+00> : vector<8x128xf32>
    %36 = tpu.matmul %34, %35, %cst_3 {dimension_numbers = #tpu.dot_dimension_numbers<[1], [0], [0], [1], [0, 0, 1, 1], [], []>} : vector<8x128xf32>, vector<128x128xf32>, vector<8x128xf32> -> vector<8x128xf32>
    %c0_4 = arith.constant 0 : index
    %c0_5 = arith.constant 0 : index
    %37 = vector.load %arg1[%c0_4, %c0_5] : memref<8x8xf32, #tpu.memory_space<vmem>>, vector<8x8xf32>
    %c0_6 = arith.constant 0 : index
    %c0_7 = arith.constant 0 : index
    %38 = vector.load %arg3[%c0_6, %c0_7] : memref<8x128xf32, #tpu.memory_space<vmem>>, vector<8x128xf32>
    %cst_8 = arith.constant dense<0.000000e+00> : vector<8x128xf32>
    %39 = tpu.matmul %37, %38, %cst_8 {dimension_numbers = #tpu.dot_dimension_numbers<[1], [0], [0], [1], [0, 0, 1, 1], [], []>} : vector<8x8xf32>, vector<8x128xf32>, vector<8x128xf32> -> vector<8x128xf32>
    %40 = arith.addf %36, %39 : vector<8x128xf32>
    %41 = arith.truncf %40 : vector<8x128xf32> to vector<8x128xbf16>
    %c0_9 = arith.constant 0 : index
    %c0_10 = arith.constant 0 : index
    %42 = vector.load %arg4[%c0_9, %c0_10] : memref<128x128xbf16, #tpu.memory_space<vmem>>, vector<128x128xbf16>
    %cst_11 = arith.constant dense<0.000000e+00> : vector<8x128xf32>
    %43 = tpu.matmul %41, %42, %cst_11 {dimension_numbers = #tpu.dot_dimension_numbers<[1], [0], [0], [1], [0, 0, 1, 1], [], []>} : vector<8x128xbf16>, vector<128x128xbf16>, vector<8x128xf32> -> vector<8x128xf32>
    %c0_12 = arith.constant 0 : index
    %c0_13 = arith.constant 0 : index
    %44 = vector.load %arg7[%c0_12, %c0_13] : memref<6x128xf32, #tpu.memory_space<vmem>>, vector<1x128xf32>
    %c1 = arith.constant 1 : index
    %c0_14 = arith.constant 0 : index
    %45 = vector.load %arg7[%c1, %c0_14] : memref<6x128xf32, #tpu.memory_space<vmem>>, vector<1x128xf32>
    %cst_15 = arith.constant dense<0.000000e+00> : vector<128xf32>
    %46 = vector.multi_reduction <add>, %43, %cst_15 [0] : vector<8x128xf32> to vector<128xf32>
    %47 = vector.shape_cast %46 : vector<128xf32> to vector<1x128xf32>
    %48 = arith.mulf %43, %43 : vector<8x128xf32>
    %cst_16 = arith.constant dense<0.000000e+00> : vector<128xf32>
    %49 = vector.multi_reduction <add>, %48, %cst_16 [0] : vector<8x128xf32> to vector<128xf32>
    %50 = vector.shape_cast %49 : vector<128xf32> to vector<1x128xf32>
    %cst_17 = arith.constant 1.250000e-01 : f32
    %51 = vector.broadcast %cst_17 : f32 to vector<1x128xf32>
    %52 = arith.mulf %47, %51 : vector<1x128xf32>
    %cst_18 = arith.constant 1.250000e-01 : f32
    %53 = vector.broadcast %cst_18 : f32 to vector<1x128xf32>
    %54 = arith.mulf %50, %53 : vector<1x128xf32>
    %55 = arith.mulf %52, %52 : vector<1x128xf32>
    %56 = arith.subf %54, %55 : vector<1x128xf32>
    %cst_19 = arith.constant 0.000000e+00 : f32
    %57 = vector.broadcast %cst_19 : f32 to vector<1x128xf32>
    %58 = arith.maximumf %56, %57 : vector<1x128xf32>
    %cst_20 = arith.constant 9.99999974E-6 : f32
    %59 = vector.broadcast %cst_20 : f32 to vector<1x128xf32>
    %60 = arith.addf %58, %59 : vector<1x128xf32>
    %61 = math.rsqrt %60 : vector<1x128xf32>
    %62 = arith.mulf %44, %61 : vector<1x128xf32>
    %63 = vector.broadcast %52 : vector<1x128xf32> to vector<8x128xf32>
    %64 = arith.subf %43, %63 : vector<8x128xf32>
    %65 = vector.broadcast %62 : vector<1x128xf32> to vector<8x128xf32>
    %66 = arith.mulf %64, %65 : vector<8x128xf32>
    %67 = vector.broadcast %45 : vector<1x128xf32> to vector<8x128xf32>
    %68 = arith.addf %66, %67 : vector<8x128xf32>
    %cst_21 = arith.constant 0.000000e+00 : f32
    %69 = vector.broadcast %cst_21 : f32 to vector<8x128xf32>
    %70 = arith.maximumf %68, %69 : vector<8x128xf32>
    %71 = arith.truncf %70 : vector<8x128xf32> to vector<8x128xbf16>
    %c0_22 = arith.constant 0 : index
    %c0_23 = arith.constant 0 : index
    %72 = vector.load %arg5[%c0_22, %c0_23] : memref<128x128xbf16, #tpu.memory_space<vmem>>, vector<128x128xbf16>
    %cst_24 = arith.constant dense<0.000000e+00> : vector<8x128xf32>
    %73 = tpu.matmul %71, %72, %cst_24 {dimension_numbers = #tpu.dot_dimension_numbers<[1], [0], [0], [1], [0, 0, 1, 1], [], []>} : vector<8x128xbf16>, vector<128x128xbf16>, vector<8x128xf32> -> vector<8x128xf32>
    %c2 = arith.constant 2 : index
    %c0_25 = arith.constant 0 : index
    %74 = vector.load %arg7[%c2, %c0_25] : memref<6x128xf32, #tpu.memory_space<vmem>>, vector<1x128xf32>
    %c3 = arith.constant 3 : index
    %c0_26 = arith.constant 0 : index
    %75 = vector.load %arg7[%c3, %c0_26] : memref<6x128xf32, #tpu.memory_space<vmem>>, vector<1x128xf32>
    %cst_27 = arith.constant dense<0.000000e+00> : vector<128xf32>
    %76 = vector.multi_reduction <add>, %73, %cst_27 [0] : vector<8x128xf32> to vector<128xf32>
    %77 = vector.shape_cast %76 : vector<128xf32> to vector<1x128xf32>
    %78 = arith.mulf %73, %73 : vector<8x128xf32>
    %cst_28 = arith.constant dense<0.000000e+00> : vector<128xf32>
    %79 = vector.multi_reduction <add>, %78, %cst_28 [0] : vector<8x128xf32> to vector<128xf32>
    %80 = vector.shape_cast %79 : vector<128xf32> to vector<1x128xf32>
    %cst_29 = arith.constant 1.250000e-01 : f32
    %81 = vector.broadcast %cst_29 : f32 to vector<1x128xf32>
    %82 = arith.mulf %77, %81 : vector<1x128xf32>
    %cst_30 = arith.constant 1.250000e-01 : f32
    %83 = vector.broadcast %cst_30 : f32 to vector<1x128xf32>
    %84 = arith.mulf %80, %83 : vector<1x128xf32>
    %85 = arith.mulf %82, %82 : vector<1x128xf32>
    %86 = arith.subf %84, %85 : vector<1x128xf32>
    %cst_31 = arith.constant 0.000000e+00 : f32
    %87 = vector.broadcast %cst_31 : f32 to vector<1x128xf32>
    %88 = arith.maximumf %86, %87 : vector<1x128xf32>
    %cst_32 = arith.constant 9.99999974E-6 : f32
    %89 = vector.broadcast %cst_32 : f32 to vector<1x128xf32>
    %90 = arith.addf %88, %89 : vector<1x128xf32>
    %91 = math.rsqrt %90 : vector<1x128xf32>
    %92 = arith.mulf %74, %91 : vector<1x128xf32>
    %93 = vector.broadcast %82 : vector<1x128xf32> to vector<8x128xf32>
    %94 = arith.subf %73, %93 : vector<8x128xf32>
    %95 = vector.broadcast %92 : vector<1x128xf32> to vector<8x128xf32>
    %96 = arith.mulf %94, %95 : vector<8x128xf32>
    %97 = vector.broadcast %75 : vector<1x128xf32> to vector<8x128xf32>
    %98 = arith.addf %96, %97 : vector<8x128xf32>
    %cst_33 = arith.constant 0.000000e+00 : f32
    %99 = vector.broadcast %cst_33 : f32 to vector<8x128xf32>
    %100 = arith.maximumf %98, %99 : vector<8x128xf32>
    %101 = arith.truncf %100 : vector<8x128xf32> to vector<8x128xbf16>
    %c0_34 = arith.constant 0 : index
    %c0_35 = arith.constant 0 : index
    %102 = vector.load %arg6[%c0_34, %c0_35] : memref<128x128xbf16, #tpu.memory_space<vmem>>, vector<128x128xbf16>
    %cst_36 = arith.constant dense<0.000000e+00> : vector<8x128xf32>
    %103 = tpu.matmul %101, %102, %cst_36 {dimension_numbers = #tpu.dot_dimension_numbers<[1], [0], [0], [1], [0, 0, 1, 1], [], []>} : vector<8x128xbf16>, vector<128x128xbf16>, vector<8x128xf32> -> vector<8x128xf32>
    %c4 = arith.constant 4 : index
    %c0_37 = arith.constant 0 : index
    %104 = vector.load %arg7[%c4, %c0_37] : memref<6x128xf32, #tpu.memory_space<vmem>>, vector<1x128xf32>
    %c5 = arith.constant 5 : index
    %c0_38 = arith.constant 0 : index
    %105 = vector.load %arg7[%c5, %c0_38] : memref<6x128xf32, #tpu.memory_space<vmem>>, vector<1x128xf32>
    %cst_39 = arith.constant dense<0.000000e+00> : vector<128xf32>
    %106 = vector.multi_reduction <add>, %103, %cst_39 [0] : vector<8x128xf32> to vector<128xf32>
    %107 = vector.shape_cast %106 : vector<128xf32> to vector<1x128xf32>
    %108 = arith.mulf %103, %103 : vector<8x128xf32>
    %cst_40 = arith.constant dense<0.000000e+00> : vector<128xf32>
    %109 = vector.multi_reduction <add>, %108, %cst_40 [0] : vector<8x128xf32> to vector<128xf32>
    %110 = vector.shape_cast %109 : vector<128xf32> to vector<1x128xf32>
    %cst_41 = arith.constant 1.250000e-01 : f32
    %111 = vector.broadcast %cst_41 : f32 to vector<1x128xf32>
    %112 = arith.mulf %107, %111 : vector<1x128xf32>
    %cst_42 = arith.constant 1.250000e-01 : f32
    %113 = vector.broadcast %cst_42 : f32 to vector<1x128xf32>
    %114 = arith.mulf %110, %113 : vector<1x128xf32>
    %115 = arith.mulf %112, %112 : vector<1x128xf32>
    %116 = arith.subf %114, %115 : vector<1x128xf32>
    %cst_43 = arith.constant 0.000000e+00 : f32
    %117 = vector.broadcast %cst_43 : f32 to vector<1x128xf32>
    %118 = arith.maximumf %116, %117 : vector<1x128xf32>
    %cst_44 = arith.constant 9.99999974E-6 : f32
    %119 = vector.broadcast %cst_44 : f32 to vector<1x128xf32>
    %120 = arith.addf %118, %119 : vector<1x128xf32>
    %121 = math.rsqrt %120 : vector<1x128xf32>
    %122 = arith.mulf %104, %121 : vector<1x128xf32>
    %123 = vector.broadcast %112 : vector<1x128xf32> to vector<8x128xf32>
    %124 = arith.subf %103, %123 : vector<8x128xf32>
    %125 = vector.broadcast %122 : vector<1x128xf32> to vector<8x128xf32>
    %126 = arith.mulf %124, %125 : vector<8x128xf32>
    %127 = vector.broadcast %105 : vector<1x128xf32> to vector<8x128xf32>
    %128 = arith.addf %126, %127 : vector<8x128xf32>
    %cst_45 = arith.constant 0.000000e+00 : f32
    %129 = vector.broadcast %cst_45 : f32 to vector<8x128xf32>
    %130 = arith.maximumf %128, %129 : vector<8x128xf32>
    %131 = vector.extract_strided_slice %130 {offsets = [0, 0], sizes = [8, 16], strides = [1, 1]} : vector<8x128xf32> to vector<8x16xf32>
    %c0_46 = arith.constant 0 : index
    %c0_47 = arith.constant 0 : index
    %132 = vector.load %arg8[%c0_46, %c0_47] : memref<8x16xf32, #tpu.memory_space<vmem>>, vector<8x16xf32>
    tpu.vector_store %arg8[%c0_46, %c0_47], %131 {strides = array<i32>} : memref<8x16xf32, #tpu.memory_space<vmem>>, vector<8x16xf32>,
    return
  }
}

</mosaic_0001>

<bundles_post_ra>
// kernel: tpu_custom_call.1
= control target key start
LH: loop header
LB: loop body
LE: loop exit
PB: predicated region body
PF: predicated region fallthrough
CT: control target
= control target key end

     0   :  { %13 = vsyncpa [#allocation3], 0  ;;  %s979_s0 = inlined_call_operand.vmem [shape: s32[8,4], index: 0, kind: input, shape index: {}]   ;;  %s980_s1 = inlined_call_operand.vmem [shape: f32[8,8], index: 1, kind: input, shape index: {}]   ;;  %s981_s2 = inlined_call_operand.hbm [shape: f32[128,128], index: 2, kind: input, shape index: {}]   ;;  %s982_s3 = inlined_call_operand.hbm [shape: f32[8,128], index: 3, kind: input, shape index: {}]   ;;  %s983_s4 = inlined_call_operand.hbm [shape: bf16[128,128], index: 4, kind: input, shape index: {}]   ;;  %s984_s5 = inlined_call_operand.hbm [shape: bf16[128,128], index: 5, kind: input, shape index: {}]   ;;  %s985_s6 = inlined_call_operand.hbm [shape: bf16[128,128], index: 6, kind: input, shape index: {}]   ;;  %s986_s7 = inlined_call_operand.vmem [shape: f32[6,128], index: 7, kind: input, shape index: {}]   ;;  %s987_s8 = inlined_call_operand.hbm [shape: f32[8,16], index: 8, kind: output, shape index: {}]  }
   0x1   :  { %14 = vsyncpa [#allocation6], 0 }
   0x2   :  { %15 = vsyncpa [#allocation9], 0  ;;  %s39_s29 = sshll.u32 %s982_s3, 4  ;;  %s40_s29 = int_to_ptr.hbm [resolvable:$true] %s39_s29 }
   0x3   :  { %16 = vsyncpa [#allocation4], 0  ;;  %s877_s30 = smov [#allocation5]   ;;  %s62_s12 = sshll.u32 %s984_s5, 4  ;;  %s63_s12 = int_to_ptr.hbm [resolvable:$true] %s62_s12 }
   0x4   :  { %s41_s9 = sshll.u32 %s877_s30, 4  ;;  %s878_s13 = smov [#allocation8]   ;;  %s42_s9 = int_to_ptr.vmem [resolvable:$true] %s41_s9 }
   0x5   :  { %44 = dma.hbm_to_vmem [thread:$0]  %s40_s29, 128, %s42_s9, [#allocation6]  }
   0x6   :  { %s64_s14 = sshll.u32 %s878_s13, 4  ;;  %s25_s17 = sshll.u32 %s981_s2, 4  ;;  %s65_s14 = int_to_ptr.vmem [resolvable:$true] %s64_s14  ;;  %s26_s17 = int_to_ptr.hbm [resolvable:$true] %s25_s17 }
   0x7   :  { %s879_s3 = smov 64   ;;  %s880_s18 = smov 4  }
   0x8   :  { %70 = dma.hbm_to_vmem [thread:$0]  %s63_s12, 1024, %s65_s14, [#allocation9], %s879_s3, %s879_s3, %s880_s18  }
   0x9   :  { %s881_s19 = smov [#allocation2]   ;;  %s49_s23 = sshll.u32 %s983_s4, 4  ;;  %s50_s23 = int_to_ptr.hbm [resolvable:$true] %s49_s23 }
   0xa   :  { %s27_s20 = sshll.u32 %s881_s19, 4  ;;  %s882_s5 = smov 128   ;;  %s28_s20 = int_to_ptr.vmem [resolvable:$true] %s27_s20 }
   0xb   :  { %s883_s24 = smov 8   ;;  %s884_s25 = smov [#allocation7]  }
   0xc   :  { %33 = dma.hbm_to_vmem [thread:$0]  %s26_s17, 2048, %s28_s20, [#allocation3], %s882_s5, %s882_s5, %s883_s24  }
   0xd   :  { %s51_s26 = sshll.u32 %s884_s25, 4  ;;  %s75_s28 = sshll.u32 %s985_s6, 4  ;;  %s52_s26 = int_to_ptr.vmem [resolvable:$true] %s51_s26  ;;  %s76_s28 = int_to_ptr.hbm [resolvable:$true] %s75_s28 }
   0xe   :  { %57 = dma.hbm_to_vmem [thread:$0]  %s50_s23, 1024, %s52_s26, [#allocation6], %s879_s3, %s879_s3, %s880_s18  }
   0xf   :  { %s885_s29 = smov [#allocation10]  }
  0x10   :  { %s77_s30 = sshll.u32 %s885_s29, 4  ;;  %s78_s30 = int_to_ptr.vmem [resolvable:$true] %s77_s30 }
  0x11   :  { %83 = dma.hbm_to_vmem [thread:$0]  %s76_s28, 1024, %s78_s30, [#allocation9], %s879_s3, %s879_s3, %s880_s18  }
  0x12   :  { %869 = dma.done.wait [#allocation3], 2048  }
  0x13   :  { %870 = vsyncadd [#allocation3], 4294965248 }
  0x14   :  { %871 = dma.done.wait [#allocation6], 1152  }
  0x15   :  { %872 = vsyncadd [#allocation6], 4294966144 }
  0x16   :  { %873 = dma.done.wait [#allocation9], 2048  }
  0x17   :  { %874 = vsyncadd [#allocation9], 4294965248  ;;  %v886_v0 = vmov 0   ;;  %v887_v1 = vmov 2   ;;  %v106_v2 = vld [vmem:[%s979_s0] sm:$0xff]  ;;  %v155_v4 = vld [vmem:[#allocation2 + $0x78] sm:$0xff]  ;;  %v107_v30 = vlaneseq }
  0x18   :  { %711 = vset.pattern.permute.xlu0 %v886_v0  ;;  %713 = vset.pattern.permute.xlu1 %v887_v1  ;;  %v157_v3 = vld [vmem:[#allocation5] sm:$0xff]  ;;  %v124_v5 = vadd.s32 96, %v106_v2  ;;  %v154_v6 = vld [vmem:[#allocation2 + $0x70] sm:$0xff]  ;;  %v153_v7 = vld [vmem:[#allocation2 + $0x68] sm:$0xff]  ;;  %v116_v9 = vadd.s32 64, %v106_v2  ;;  %v132_v11 = vadd.s32 112, %v106_v2 }
  0x19   :  { %110 = vperm.xlu0 %711, %v106_v2   ;;  %177 = vmatpush.msra.mxu1 %v157_v3  ;;  %v152_v8 = vld [vmem:[#allocation2 + $0x60] sm:$0xff]  ;;  %v151_v10 = vld [vmem:[#allocation2 + $0x58] sm:$0xff]  ;;  %v888_v12 = vmov 1   ;;  %v150_v13 = vld [vmem:[#allocation2 + $0x50] sm:$0xff]  ;;  %v889_v14 = vmov 3   ;;  %vm158_vm0 = vcmask 64512  }
  0x1a   :  { %126 = vperm.xlu1 %713, %v124_v5   ;;  %v149_v15 = vld [vmem:[#allocation2 + $0x48] sm:$0xff]  ;;  %v148_v16 = vld [vmem:[#allocation2 + $0x40] sm:$0xff]  ;;  %v147_v17 = vld [vmem:[#allocation2 + $0x38] sm:$0xff]  ;;  %v108_v34 = vand.u32 127, %v107_v30  ;;  %v890_v36 = vmov 0.0   ;;  %s891_s20 = smov [#allocation11]  }
  0x1b   :  { %182 = vmatpush.msrb.mxu1 %v155_v4  ;;  %v146_v18 = vld [vmem:[#allocation2 + $0x30] sm:$0xff]  ;;  %v145_v19 = vld [vmem:[#allocation2 + $0x28] sm:$0xff]  ;;  %v144_v20 = vld [vmem:[#allocation2 + $0x20] sm:$0xff]  ;;  %s557_s21 = sshll.u32 %s891_s20, 4  ;;  %s559_s5 = sshll.u32 %s987_s8, 4  ;;  %vm550_vm14 = vcmask 130048   ;;  %s558_s21 = int_to_ptr.vmem [resolvable:$true] %s557_s21  ;;  %s560_s5 = int_to_ptr.hbm [resolvable:$true] %s559_s5 }
  0x1c   :  { %v156_v21 = vld [vmem:[%s980_s1] sm:$0xff]  ;;  %v143_v22 = vld [vmem:[#allocation2 + $0x18] sm:$0xff]  ;;  %v142_v23 = vld [vmem:[#allocation2 + $0x10] sm:$0xff] }
  0x1d   :  { %183 = vmatpush.msrb.mxu1 %v154_v6  ;;  %v141_v24 = vld [vmem:[#allocation2 + $0x8] sm:$0xff]  ;;  %v140_v25 = vld [vmem:[#allocation2] sm:$0xff]  ;;  %v678_v27 = vld [vmem:[#allocation7 + $0x30] sm:$0xff] }
  0x1e   :  { %575 = vmatmul.msk.f32.vlgmr.msra.gmra.mxu1 %vm158_vm0, %v156_v21  ;;  %v679_v26 = vld [vmem:[#allocation7 + $0x38] sm:$0xff]  ;;  %v677_v28 = vld [vmem:[#allocation7 + $0x28] sm:$0xff]  ;;  %v676_v29 = vld [vmem:[#allocation7 + $0x20] sm:$0xff] }
  0x1f   :  { %184 = vmatpush.msrb.mxu1 %v153_v7  ;;  %267 = vmatpush.bf16.msra.mxu2 %v679_v26  ;;  %v675_v32 = vld [vmem:[#allocation7 + $0x18] sm:$0xff]  ;;  %v674_v45 = vld [vmem:[#allocation7 + $0x10] sm:$0xff]  ;;  %v673_v46 = vld [vmem:[#allocation7 + $0x8] sm:$0xff] }
  0x20   :  { %v672_v47 = vld [vmem:[#allocation7] sm:$0xff]  ;;  %v687_v52 = vld [vmem:[#allocation8 + $0x38] sm:$0xff]  ;;  %v686_v53 = vld [vmem:[#allocation8 + $0x30] sm:$0xff] }
  0x21   :  { %185 = vmatpush.msrb.mxu1 %v152_v8  ;;  %712 = vset.pattern.permute.xlu0 %v888_v12  ;;  %v685_v54 = vld [vmem:[#allocation8 + $0x28] sm:$0xff]  ;;  %v684_v55 = vld [vmem:[#allocation8 + $0x20] sm:$0xff]  ;;  %v683_v59 = vld [vmem:[#allocation8 + $0x18] sm:$0xff] }
  0x22   :  { %118 = vperm.xlu0 %712, %v116_v9   ;;  %714 = vset.pattern.permute.xlu1 %v889_v14  ;;  %v682_v0 = vld [vmem:[#allocation8 + $0x10] sm:$0xff]  ;;  %v681_v6 = vld [vmem:[#allocation8 + $0x8] sm:$0xff] }
  0x23   :  { %186 = vmatpush.msrb.mxu1 %v151_v10  ;;  %134 = vperm.xlu1 %714, %v132_v11   ;;  %v680_v11 = vld [vmem:[#allocation8] sm:$0xff] }
  0x24   :  { %268 = vmatpush.bf16.msra.mxu2 %v678_v27  ;;  %383 = vmatpush.bf16.msra.mxu3 %v687_v52 }
  0x25   :  { %187 = vmatpush.msrb.mxu1 %v150_v13 }
  0x27   :  { %188 = vmatpush.msrb.mxu1 %v149_v15 }
  0x28   :  { %269 = vmatpush.bf16.msra.mxu2 %v677_v28  ;;  %384 = vmatpush.bf16.msra.mxu3 %v686_v53  ;;  %v716_v28 = vld [vmem:[%s986_s7 + $0x1] ss:$0 sm:$0xff] }
  0x29   :  { %189 = vmatpush.msrb.mxu1 %v148_v16 }
  0x2a   :  { %715 = vset.pattern.permute.xlu0 %v889_v14 }
  0x2b   :  { %190 = vmatpush.msrb.mxu1 %v147_v17 }
  0x2c   :  { %270 = vmatpush.bf16.msra.mxu2 %v676_v29  ;;  %385 = vmatpush.bf16.msra.mxu3 %v685_v54 }
  0x2d   :  { %191 = vmatpush.msrb.mxu1 %v146_v18 }
  0x2f   :  { %192 = vmatpush.msrb.mxu1 %v145_v19 }
  0x30   :  { %271 = vmatpush.bf16.msra.mxu2 %v675_v32  ;;  %386 = vmatpush.bf16.msra.mxu3 %v684_v55 }
  0x31   :  { %193 = vmatpush.msrb.mxu1 %v144_v20 }
  0x33   :  { %194 = vmatpush.msrb.mxu1 %v143_v22  ;;  %v280_v22 = vld [vmem:[%s986_s7] sm:$0x1] }
  0x34   :  { %272 = vmatpush.bf16.msra.mxu2 %v674_v45  ;;  %387 = vmatpush.bf16.msra.mxu3 %v683_v59  ;;  %v690_v45 = vld [vmem:[#allocation10 + $0x10] sm:$0xff] }
  0x35   :  { %195 = vmatpush.msrb.mxu1 %v142_v23 }
  0x37   :  { %196 = vmatpush.msrb.mxu1 %v141_v24 }
  0x38   :  { %273 = vmatpush.bf16.msra.mxu2 %v673_v46  ;;  %388 = vmatpush.bf16.msra.mxu3 %v682_v0 }
  0x39   :  { %197 = vmatpush.msrb.mxu1 %v140_v25 }
  0x3c   :  { %274 = vmatpush.bf16.msra.mxu2 %v672_v47  ;;  %389 = vmatpush.bf16.msra.mxu3 %v681_v6 }
  0x40   :  { %390 = vmatpush.bf16.msra.mxu3 %v680_v11 }
  0x8b   :  { %v111_v31 = vpop.permute.xlu0 %110 }
  0x8c   :  { %v127_v33 = vpop.permute.xlu1 %126  ;;  %vm112_vm1 = vcmp.eq.s32.totalorder %v108_v34, %v111_v31 }
  0x8d   :  { %vm128_vm2 = vcmp.eq.s32.totalorder %v108_v34, %v127_v33  ;;  %v571_v37 = vsel %vm112_vm1, 1.0, %v890_v36  ;;  %v695_v33 = vld [vmem:[#allocation10 + $0x38] sm:$0xff] }
  0x8e   :  { %v573_v41 = vsel %vm128_vm2, 1.0, %v890_v36  ;;  %499 = vmatpush.bf16.msra.mxu0 %v695_v33 }
  0x94   :  { %v119_v35 = vpop.permute.xlu0 %118 }
  0x95   :  { %vm120_vm3 = vcmp.eq.s32.totalorder %v108_v34, %v119_v35  ;;  %v135_v39 = vpop.permute.xlu1 %134  ;;  %v693_v35 = vld [vmem:[#allocation10 + $0x28] sm:$0xff] }
  0x96   :  { %v572_v38 = vsel %vm120_vm3, 1.0, %v890_v36  ;;  %vm136_vm4 = vcmp.eq.s32.totalorder %v108_v34, %v135_v39  ;;  %v694_v34 = vld [vmem:[#allocation10 + $0x30] sm:$0xff] }
  0x97   :  { %v123_v40 = vadd.f32 %v572_v38, %v571_v37  ;;  %v574_v42 = vsel %vm136_vm4, 1.0, %v890_v36  ;;  %500 = vmatpush.bf16.msra.mxu0 %v694_v34  ;;  %v692_v36 = vld [vmem:[#allocation10 + $0x20] sm:$0xff] }
  0x99   :  { %v131_v43 = vadd.f32 %v573_v41, %v123_v40  ;;  %v691_v40 = vld [vmem:[#allocation10 + $0x18] sm:$0xff] }
  0x9b   :  { %v139_v44 = vadd.f32 %v574_v42, %v131_v43  ;;  %v179_v48 = vpop.f32.mrf.mxu1  ;;  %501 = vmatpush.bf16.msra.mxu0 %v693_v35 }
  0x9d   :  { %198 = vmatmul.f32.vlgmr.msrb.gmra.mxu1 %v139_v44 }
  0x9f   :  { %502 = vmatpush.bf16.msra.mxu0 %v692_v36 }
  0xa3   :  { %503 = vmatpush.bf16.msra.mxu0 %v691_v40  ;;  %v512_v40 = vld [vmem:[%s986_s7 + $0x4] sm:$0x1] }
  0xa7   :  { %504 = vmatpush.bf16.msra.mxu0 %v690_v45 }
 0x11a   :  { %v199_v49 = vpop.f32.mrf.mxu1 }
 0x11b   :  { %v200_v50 = vadd.f32 %v199_v49, %v179_v48 }
 0x11d   :  { %v202_v51 = vpack.c.bf16 %v200_v50, %v200_v50 }
 0x11f   :  { %275 = vmatmul.bf16.vlgmr.msra.gmra.mxu2 %v202_v51  ;;  %v689_v51 = vld [vmem:[#allocation10 + $0x8] sm:$0xff] }
 0x120   :  { %505 = vmatpush.bf16.msra.mxu0 %v689_v51 }
 0x1a2   :  { %v276_v56 = vpop.f32.mrf.mxu2 }
 0x1a3   :  { %v282_v57 = vrot.slane %v276_v56, 4  ;;  %v288_v58 = vmul.f32 %v276_v56, %v276_v56 }
 0x1a5   :  { %v283_v60 = vadd.f32 %v282_v57, %v276_v56  ;;  %v289_v61 = vrot.slane %v288_v58, 4 }
 0x1a7   :  { %v284_v62 = vrot.slane %v283_v60, 2  ;;  %v290_v63 = vadd.f32 %v289_v61, %v288_v58 }
 0x1a9   :  { %v285_v1 = vadd.f32 %v284_v62, %v283_v60  ;;  %v291_v2 = vrot.slane %v290_v63, 2 }
 0x1aa   :  { %v278_v3 = vpop.f32.mrf.mxu2 }
 0x1ab   :  { %v286_v4 = vrot.slane %v285_v1, 1  ;;  %v292_v5 = vadd.f32 %v291_v2, %v290_v63  ;;  %v396_v3 = vld [vmem:[%s986_s7 + $0x2] sm:$0x1] }
 0x1ad   :  { %v287_v7 = vadd.f32 %v286_v4, %v285_v1  ;;  %v293_v8 = vrot.slane %v292_v5, 1 }
 0x1af   :  { %v294_v9 = vadd.f32 %v293_v8, %v292_v5  ;;  %v295_v10 = vmul.f32 0.125, %v287_v7 }
 0x1b1   :  { %v296_v12 = vmul.f32 0.125, %v294_v9  ;;  %v297_v13 = vmul.f32 %v295_v10, %v295_v10  ;;  %v312_v26 = vsub.f32 %v276_v56, %v295_v10  ;;  %v688_v56 = vld [vmem:[#allocation10] sm:$0xff]  ;;  %v717_v9 = vld [vmem:[%s986_s7 + $0x3] ss:$0 sm:$0xff] }
 0x1b2   :  { %506 = vmatpush.bf16.msra.mxu0 %v688_v56 }
 0x1b3   :  { %v298_v14 = vsub.f32 %v296_v12, %v297_v13 }
 0x1b5   :  { %v299_v15 = vmax.f32 %v298_v14, 0.0 }
 0x1b7   :  { %v300_v16 = vadd.f32 1e-05, %v299_v15 }
 0x1b9   :  { %719 = vrsqrt.f32 %v300_v16  ;;  %vm307_vm6 = vweird.f32 %v300_v16 }
 0x1bf   :  { %v720_v17 = vpop.eup %719 }
 0x1c0   :  { %v302_v18 = vmul.f32 %v720_v17, %v300_v16  ;;  %vm308_vm5 = vweird.f32 %v720_v17 }
 0x1c1   :  { %vm309_vm7 = vmor %vm307_vm6, %vm308_vm5 }
 0x1c2   :  { %v303_v19 = vmul.f32 %v720_v17, %v302_v18 }
 0x1c4   :  { %v304_v20 = vmul.f32 0.5, %v303_v19 }
 0x1c6   :  { %v305_v21 = vsub.f32 1.5, %v304_v20 }
 0x1c8   :  { %v306_v23 = vmul.f32 %v720_v17, %v305_v21 }
 0x1ca   :  { %v310_v24 = vsel %vm309_vm7, %v720_v17, %v306_v23 }
 0x1cb   :  { %v311_v25 = vmul.f32 %v310_v24, %v280_v22 }
 0x1cd   :  { %v313_v27 = vperm.slane %v311_v25, 0 }
 0x1cf   :  { %v314_v29 = vmul.f32 %v313_v27, %v312_v26 }
 0x1d1   :  { %v316_v30 = vadd.f32 %v716_v28, %v314_v29 }
 0x1d3   :  { %v317_v31 = vmax.f32 %v316_v30, 0.0 }
 0x1d5   :  { %v318_v32 = vpack.c.bf16 %v317_v31, %v317_v31 }
 0x1d7   :  { %391 = vmatmul.bf16.vlgmr.msra.gmra.mxu3 %v318_v32 }
 0x25a   :  { %v392_v37 = vpop.f32.mrf.mxu3 }
 0x25b   :  { %v398_v38 = vrot.slane %v392_v37, 4  ;;  %v404_v39 = vmul.f32 %v392_v37, %v392_v37 }
 0x25d   :  { %v399_v41 = vadd.f32 %v398_v38, %v392_v37  ;;  %v405_v42 = vrot.slane %v404_v39, 4 }
 0x25f   :  { %v400_v43 = vrot.slane %v399_v41, 2  ;;  %v406_v44 = vadd.f32 %v405_v42, %v404_v39 }
 0x261   :  { %v401_v46 = vadd.f32 %v400_v43, %v399_v41  ;;  %v407_v47 = vrot.slane %v406_v44, 2 }
 0x262   :  { %v394_v48 = vpop.f32.mrf.mxu3 }
 0x263   :  { %v402_v49 = vrot.slane %v401_v46, 1  ;;  %v408_v50 = vadd.f32 %v407_v47, %v406_v44 }
 0x265   :  { %v403_v52 = vadd.f32 %v402_v49, %v401_v46  ;;  %v409_v53 = vrot.slane %v408_v50, 1  ;;  %v718_v46 = vld [vmem:[%s986_s7 + $0x5] ss:$0 sm:$0xff] }
 0x267   :  { %v410_v54 = vadd.f32 %v409_v53, %v408_v50  ;;  %v411_v55 = vmul.f32 0.125, %v403_v52 }
 0x269   :  { %v412_v57 = vmul.f32 0.125, %v410_v54  ;;  %v413_v58 = vmul.f32 %v411_v55, %v411_v55  ;;  %v428_v7 = vsub.f32 %v392_v37, %v411_v55 }
 0x26b   :  { %v414_v59 = vsub.f32 %v412_v57, %v413_v58 }
 0x26d   :  { %v415_v60 = vmax.f32 %v414_v59, 0.0 }
 0x26f   :  { %v416_v61 = vadd.f32 1e-05, %v415_v60 }
 0x271   :  { %721 = vrsqrt.f32 %v416_v61  ;;  %vm423_vm9 = vweird.f32 %v416_v61 }
 0x277   :  { %v722_v62 = vpop.eup %721 }
 0x278   :  { %v418_v63 = vmul.f32 %v722_v62, %v416_v61  ;;  %vm424_vm8 = vweird.f32 %v722_v62 }
 0x279   :  { %vm425_vm10 = vmor %vm423_vm9, %vm424_vm8 }
 0x27a   :  { %v419_v0 = vmul.f32 %v722_v62, %v418_v63 }
 0x27c   :  { %v420_v1 = vmul.f32 0.5, %v419_v0 }
 0x27e   :  { %v421_v2 = vsub.f32 1.5, %v420_v1 }
 0x280   :  { %v422_v4 = vmul.f32 %v722_v62, %v421_v2 }
 0x282   :  { %v426_v5 = vsel %vm425_vm10, %v722_v62, %v422_v4 }
 0x283   :  { %v427_v6 = vmul.f32 %v426_v5, %v396_v3 }
 0x285   :  { %v429_v8 = vperm.slane %v427_v6, 0 }
 0x287   :  { %v430_v10 = vmul.f32 %v429_v8, %v428_v7 }
 0x289   :  { %v432_v11 = vadd.f32 %v717_v9, %v430_v10 }
 0x28b   :  { %v433_v12 = vmax.f32 %v432_v11, 0.0 }
 0x28d   :  { %v434_v13 = vpack.c.bf16 %v433_v12, %v433_v12 }
 0x28f   :  { %507 = vmatmul.bf16.vlgmr.msra.gmra.mxu0 %v434_v13 }
 0x30c   :  { %v508_v14 = vpop.f32.mrf.mxu0 }
 0x30d   :  { %v514_v15 = vrot.slane %v508_v14, 4  ;;  %v520_v16 = vmul.f32 %v508_v14, %v508_v14 }
 0x30f   :  { %v515_v17 = vadd.f32 %v514_v15, %v508_v14  ;;  %v521_v18 = vrot.slane %v520_v16, 4 }
 0x311   :  { %v516_v19 = vrot.slane %v515_v17, 2  ;;  %v522_v20 = vadd.f32 %v521_v18, %v520_v16 }
 0x313   :  { %v517_v21 = vadd.f32 %v516_v19, %v515_v17  ;;  %v523_v22 = vrot.slane %v522_v20, 2 }
 0x314   :  { %v510_v23 = vpop.f32.mrf.mxu0 }
 0x315   :  { %v518_v24 = vrot.slane %v517_v21, 1  ;;  %v524_v25 = vadd.f32 %v523_v22, %v522_v20 }
 0x317   :  { %v519_v26 = vadd.f32 %v518_v24, %v517_v21  ;;  %v525_v27 = vrot.slane %v524_v25, 1 }
 0x319   :  { %v526_v28 = vadd.f32 %v525_v27, %v524_v25  ;;  %v527_v29 = vmul.f32 0.125, %v519_v26 }
 0x31b   :  { %v528_v30 = vmul.f32 0.125, %v526_v28  ;;  %v529_v31 = vmul.f32 %v527_v29, %v527_v29  ;;  %v544_v44 = vsub.f32 %v508_v14, %v527_v29 }
 0x31d   :  { %v530_v32 = vsub.f32 %v528_v30, %v529_v31 }
 0x31f   :  { %v531_v33 = vmax.f32 %v530_v32, 0.0 }
 0x321   :  { %v532_v34 = vadd.f32 1e-05, %v531_v33 }
 0x323   :  { %723 = vrsqrt.f32 %v532_v34  ;;  %vm539_vm12 = vweird.f32 %v532_v34 }
 0x329   :  { %v724_v35 = vpop.eup %723 }
 0x32a   :  { %v534_v36 = vmul.f32 %v724_v35, %v532_v34  ;;  %vm540_vm11 = vweird.f32 %v724_v35 }
 0x32b   :  { %vm541_vm13 = vmor %vm539_vm12, %vm540_vm11 }
 0x32c   :  { %v535_v37 = vmul.f32 %v724_v35, %v534_v36 }
 0x32e   :  { %v536_v38 = vmul.f32 0.5, %v535_v37 }
 0x330   :  { %v537_v39 = vsub.f32 1.5, %v536_v38 }
 0x332   :  { %v538_v41 = vmul.f32 %v724_v35, %v537_v39 }
 0x334   :  { %v542_v42 = vsel %vm541_vm13, %v724_v35, %v538_v41 }
 0x335   :  { %v543_v43 = vmul.f32 %v542_v42, %v512_v40 }
 0x337   :  { %v545_v45 = vperm.slane %v543_v43, 0 }
 0x339   :  { %v546_v47 = vmul.f32 %v545_v45, %v544_v44 }
 0x33b   :  { %v548_v48 = vadd.f32 %v718_v46, %v546_v47 }
 0x33d   :  { %v549_v49 = vmax.f32 %v548_v48, 0.0 }
 0x33f   :  { %551 = vst.msk [vmem:[#allocation11] sm:$0xff] %vm550_vm14, %v549_v49 }
 0x340   :  { %562 = dma.vmem_to_hbm [thread:$0]  %s558_s21, 128, %s560_s5, [#allocation4]  }
 0x341   :  { %875 = dma.done.wait [#allocation4], 128  }
 0x342   :  { %876 = vsyncadd [#allocation4], 4294967168 }
 0x343   :  { %567 = vsyncpa [#allocation3], 1 }
 0x344   :  { %568 = vsyncpa [#allocation6], 1 }
 0x345   :  { %569 = vsyncpa [#allocation9], 1 }
 0x346   :  { %570 = vsyncpa [#allocation4], 1 }

</bundles_post_ra>
